<compile_context>
chip_gen: v7x
topology: tpu7x:2x2x1
jax: 0.10.0
libtpu: 0.0.40
codegen_flags: <defaults>
</compile_context>

<pallas_src>
import functools

import jax
import jax.numpy as jnp
from jax import lax
from jax.experimental import pallas as pl
from jax.experimental.pallas import tpu as pltpu


def _parallel_head_kernel(x_ref, wct_ref, bc_ref, wft_ref, bf_ref, out_ref,
                          xsp_ref, patch_ref, *, W):
    # x_ref    : (1, Cin, H*W)          f32   NCHW input, spatial flattened
    # wct_ref  : (Chid, 9*Cin)          bf16  im2col 3x3 conv weight (transposed)
    # bc_ref   : (Chid, 1)              f32   conv bias (column vector)
    # wft_ref  : (C1+C2, Chid)          bf16  fused 1x1 head weight (transposed)
    # bf_ref   : (C1+C2, 1)             f32   fused head bias
    # out_ref  : (1, C1+C2, H*W)        f32   fused head output (lane-dense)
    # xsp_ref  : (Cin, H*W + 2*(W+1))   f32   scratch: flat zero-halo padded input
    # patch_ref: (9*Cin, H*W)           f32   scratch: im2col matrix (K x M)
    Cin = x_ref.shape[1]
    HW = x_ref.shape[2]
    Cout = out_ref.shape[1]
    P = W + 1                                   # flat halo width >= |(+-1 row) +- 1|

    # --- in-kernel zero padding: zero only the two halo strips, then copy x ---
    xsp_ref[:, :P] = jnp.zeros((Cin, P), xsp_ref.dtype)
    xsp_ref[:, P + HW:] = jnp.zeros((Cin, P), xsp_ref.dtype)
    xsp_ref[:, P:P + HW] = x_ref[0]

    # Column index of every output pixel (lane); row out-of-bounds is handled by
    # the zero halo, columns that would wrap to the neighbouring row are masked.
    w_idx = lax.broadcasted_iota(jnp.int32, (Cin, HW), 1) % W

    # --- im2col: 9 shifted copies of the flattened input, stacked along K ---
    for dy in range(3):
        for dx in range(3):
            s = (dy - 1) * W + (dx - 1)          # flat shift of this tap
            tap = xsp_ref[:, P + s:P + s + HW]   # (Cin, HW), static lane offset
            if dx == 0:
                tap = jnp.where(w_idx >= 1, tap, 0.0)
            elif dx == 2:
                tap = jnp.where(w_idx <= W - 2, tap, 0.0)
            t = dy * 3 + dx
            patch_ref[t * Cin:(t + 1) * Cin, :] = tap

    patches = patch_ref[...].astype(jnp.bfloat16)           # (9*Cin, HW)

    # --- 3x3 "same" conv == ONE MXU matmul (bf16 operands, f32 accumulate) ---
    hidden = jnp.dot(wct_ref[...], patches,
                     preferred_element_type=jnp.float32) + bc_ref[...]
    hidden = jnp.maximum(hidden, 0.0)                        # ReLU, (Chid, HW)

    # --- both 1x1 heads fused into ONE matmul; lane-dense (Cout, HW) result ---
    out = jnp.dot(wft_ref[...], hidden.astype(jnp.bfloat16),
                  preferred_element_type=jnp.float32) + bf_ref[...]
    out_ref[...] = out.reshape(1, Cout, HW).astype(out_ref.dtype)


def parallel_model(x_nchw, wc, bc, w1, b1, w2, b2):
    """x_nchw: (B, Cin, H, W).  wc: (3,3,Cin,Chid) HWIO, biases (1, C),
    head weights (Chid, Cout_i).  Returns (head1, head2) in NCHW, matching the
    PyTorch ParallelModel.forward."""
    B, Cin, H, W = x_nchw.shape
    Chid = wc.shape[3]
    C1, C2 = w1.shape[1], w2.shape[1]
    Cout = C1 + C2
    HW = H * W
    P = W + 1

    # Native NCHW, spatial flattened (free row-major reshape; no transpose, no pad).
    x_flat = x_nchw.reshape(B, Cin, HW)

    # im2col conv weight, transposed so H*W stays the minor (lane) dim throughout:
    #   wct[o, t*Cin + c] = wc[dy, dx, c, o],  t = dy*3 + dx
    wct = jnp.transpose(wc.reshape(9 * Cin, Chid)).astype(jnp.bfloat16)       # (Chid, 9*Cin)
    bc_col = bc.reshape(Chid, 1).astype(jnp.float32)

    # Fuse both 1x1 heads into a single matmul (single lane-dense output).
    wft = jnp.transpose(jnp.concatenate([w1, w2], axis=1)).astype(jnp.bfloat16)  # (Cout, Chid)
    bf_col = jnp.concatenate([b1, b2], axis=1).reshape(Cout, 1).astype(jnp.float32)

    out = pl.pallas_call(
        functools.partial(_parallel_head_kernel, W=W),
        out_shape=jax.ShapeDtypeStruct((B, Cout, HW), x_nchw.dtype),
        grid_spec=pltpu.PrefetchScalarGridSpec(
            num_scalar_prefetch=0,
            grid=(B,),
            in_specs=[
                pl.BlockSpec((1, Cin, HW), lambda b: (b, 0, 0)),
                pl.BlockSpec((Chid, 9 * Cin), lambda b: (0, 0)),
                pl.BlockSpec((Chid, 1), lambda b: (0, 0)),
                pl.BlockSpec((Cout, Chid), lambda b: (0, 0)),
                pl.BlockSpec((Cout, 1), lambda b: (0, 0)),
            ],
            out_specs=pl.BlockSpec((1, Cout, HW), lambda b: (b, 0, 0)),
            scratch_shapes=[
                pltpu.VMEM((Cin, HW + 2 * P), jnp.float32),   # flat halo-padded input
                pltpu.VMEM((9 * Cin, HW), jnp.float32),       # im2col matrix
            ],
        ),
        compiler_params=pltpu.CompilerParams(
            dimension_semantics=("parallel",)),               # v7x: one TC per batch elem
    )(x_flat, wct, bc_col, wft, bf_col)

    out = out.reshape(B, Cout, H, W)
    return out[:, :C1], out[:, C1:]


def _reference(x, wc, bc, w1, b1, w2, b2, emulate_bf16=False):
    """Pure-JAX reference (lax.conv).  With emulate_bf16=True, inputs/weights and
    the hidden activation are rounded to bf16 to mirror the kernel's MXU dtypes."""
    rb = (lambda a: a.astype(jnp.bfloat16).astype(jnp.float32)) if emulate_bf16 \
        else (lambda a: a)
    wc_oihw = jnp.transpose(rb(wc), (3, 2, 0, 1))             # HWIO -> OIHW
    hid = lax.conv_general_dilated(
        rb(x), wc_oihw, window_strides=(1, 1), padding="SAME",
        dimension_numbers=("NCHW", "OIHW", "NCHW"))
    hid = jax.nn.relu(hid + bc.reshape(1, -1, 1, 1))
    hid = rb(hid)
    h1 = jnp.einsum("bchw,cd->bdhw", hid, rb(w1)) + b1.reshape(1, -1, 1, 1)
    h2 = jnp.einsum("bchw,cd->bdhw", hid, rb(w2)) + b2.reshape(1, -1, 1, 1)
    return h1, h2


if __name__ == "__main__":
    # TODO(synk): BaseModel's backbone (img2feats/imgpre2feats) and the ConvGRU
    # recurrent path are abstract / framework plumbing and are not kernelized;
    # only the ParallelModel head stack (3x3 conv -> ReLU -> two 1x1 heads) is.
    B, Cin, H, W = 2, 4, 16, 16
    Chid, C1, C2 = 32, 8, 2

    key = jax.random.PRNGKey(0)
    kx, kwc, kbc, kw1, kb1, kw2, kb2 = jax.random.split(key, 7)

    x = jax.random.normal(kx, (B, Cin, H, W), jnp.float32)
    # Deterministic synthetic parameters (no checkpoint load).
    wc = jax.random.normal(kwc, (3, 3, Cin, Chid), jnp.float32) * 0.1
    bc = jax.random.normal(kbc, (1, Chid), jnp.float32) * 0.1
    w1 = jax.random.normal(kw1, (Chid, C1), jnp.float32) * 0.1
    b1 = jax.random.normal(kb1, (1, C1), jnp.float32) * 0.1
    w2 = jax.random.normal(kw2, (Chid, C2), jnp.float32) * 0.1
    b2 = jax.random.normal(kb2, (1, C2), jnp.float32) * 0.1

    out1, out2 = jax.jit(parallel_model)(x, wc, bc, w1, b1, w2, b2)
    jax.block_until_ready((out1, out2))

    assert out1.shape == (B, C1, H, W) and out2.shape == (B, C2, H, W)

    # Tight check: reference with the same bf16 operand rounding as the kernel.
    refb1, refb2 = _reference(x, wc, bc, w1, b1, w2, b2, emulate_bf16=True)
    assert jnp.allclose(out1, refb1, atol=2e-2, rtol=2e-2)
    assert jnp.allclose(out2, refb2, atol=2e-2, rtol=2e-2)

    # Sanity check: full-f32 module semantics, tolerance = bf16 operand precision.
    ref1, ref2 = _reference(x, wc, bc, w1, b1, w2, b2, emulate_bf16=False)
    assert jnp.allclose(out1, ref1, atol=1e-1, rtol=1e-1)
    assert jnp.allclose(out2, ref2, atol=1e-1, rtol=1e-1)

    print("KERNEL_OK")
</pallas_src>

<mosaic_0001>
module attributes {stable_mosaic.version = 11 : i64} {
  func.func @_parallel_head_kernel(%arg0: i32, %arg1: memref<1x4x256xf32, #tpu.memory_space<vmem>>, %arg2: memref<32x36xbf16, #tpu.memory_space<vmem>>, %arg3: memref<32x1xf32, #tpu.memory_space<vmem>>, %arg4: memref<10x32xbf16, #tpu.memory_space<vmem>>, %arg5: memref<10x1xf32, #tpu.memory_space<vmem>>, %arg6: memref<1x10x256xf32, #tpu.memory_space<vmem>>, %arg7: memref<4x290xf32, #tpu.memory_space<vmem>>, %arg8: memref<36x256xf32, #tpu.memory_space<vmem>>) attributes {dimension_semantics = [#tpu.dimension_semantics<parallel>], iteration_bounds = array<i64: 2>, scalar_prefetch = 0 : i64, scratch_operands = 2 : i64, tpu.core_type = #tpu.core_type<tc>, window_params = [{transform_indices = @transform_0, window_bounds = array<i64: 1, 4, 256>}, {pipeline_mode = #tpu.pipeline_mode<synchronous>, transform_indices = @transform_1, window_bounds = array<i64: 32, 36>}, {pipeline_mode = #tpu.pipeline_mode<synchronous>, transform_indices = @transform_2, window_bounds = array<i64: 32, 1>}, {pipeline_mode = #tpu.pipeline_mode<synchronous>, transform_indices = @transform_3, window_bounds = array<i64: 10, 32>}, {pipeline_mode = #tpu.pipeline_mode<synchronous>, transform_indices = @transform_4, window_bounds = array<i64: 10, 1>}, {transform_indices = @transform_5, window_bounds = array<i64: 1, 10, 256>}]} {
    %cst = arith.constant 0.000000e+00 : f32
    %0 = vector.broadcast %cst : f32 to vector<4x17xf32>
    %c0 = arith.constant 0 : index
    %c0_0 = arith.constant 0 : index
    %1 = vector.load %arg7[%c0, %c0_0] : memref<4x290xf32, #tpu.memory_space<vmem>>, vector<4x17xf32>
    tpu.vector_store %arg7[%c0, %c0_0], %0 {strides = array<i32>} : memref<4x290xf32, #tpu.memory_space<vmem>>, vector<4x17xf32>,
    %cst_1 = arith.constant 0.000000e+00 : f32
    %2 = vector.broadcast %cst_1 : f32 to vector<4x17xf32>
    %c0_2 = arith.constant 0 : index
    %c273 = arith.constant 273 : index
    %3 = vector.load %arg7[%c0_2, %c273] : memref<4x290xf32, #tpu.memory_space<vmem>>, vector<4x17xf32>
    tpu.vector_store %arg7[%c0_2, %c273], %2 {strides = array<i32>} : memref<4x290xf32, #tpu.memory_space<vmem>>, vector<4x17xf32>,
    %c0_3 = arith.constant 0 : index
    %c0_4 = arith.constant 0 : index
    %c0_5 = arith.constant 0 : index
    %4 = vector.load %arg1[%c0_3, %c0_4, %c0_5] : memref<1x4x256xf32, #tpu.memory_space<vmem>>, vector<1x4x256xf32>
    %5 = vector.shape_cast %4 : vector<1x4x256xf32> to vector<4x256xf32>
    %c0_6 = arith.constant 0 : index
    %c17 = arith.constant 17 : index
    %6 = vector.load %arg7[%c0_6, %c17] : memref<4x290xf32, #tpu.memory_space<vmem>>, vector<4x256xf32>
    tpu.vector_store %arg7[%c0_6, %c17], %5 {strides = array<i32>} : memref<4x290xf32, #tpu.memory_space<vmem>>, vector<4x256xf32>,
    %7 = tpu.iota {dimensions = array<i32: 1>} : vector<4x256xi32>
    %c16_i32 = arith.constant 16 : i32
    %c0_i32 = arith.constant 0 : i32
    %8 = arith.cmpi eq, %c16_i32, %c0_i32 : i32
    %c1_i32 = arith.constant 1 : i32
    %9 = arith.select %8, %c1_i32, %c16_i32 : i32
    %10 = vector.broadcast %9 : i32 to vector<4x256xi32>
    %11 = arith.remsi %7, %10 : vector<4x256xi32>
    %c0_i32_7 = arith.constant 0 : i32
    %12 = vector.broadcast %c0_i32_7 : i32 to vector<4x256xi32>
    %13 = arith.cmpi ne, %11, %12 : vector<4x256xi32>
    %c0_i32_8 = arith.constant 0 : i32
    %14 = vector.broadcast %c0_i32_8 : i32 to vector<4x256xi32>
    %15 = arith.cmpi slt, %11, %14 : vector<4x256xi32>
    %c0_i32_9 = arith.constant 0 : i32
    %16 = arith.cmpi slt, %9, %c0_i32_9 : i32
    %17 = vector.broadcast %16 : i1 to vector<4x256xi1>
    %18 = vector.broadcast %17 : vector<4x256xi1> to vector<4x256xi1>
    %19 = arith.xori %15, %18 : vector<4x256xi1>
    %20 = arith.andi %19, %13 : vector<4x256xi1>
    %21 = vector.broadcast %9 : i32 to vector<4x256xi32>
    %22 = arith.addi %11, %21 : vector<4x256xi32>
    %23 = arith.select %20, %22, %11 : vector<4x256xi1>, vector<4x256xi32>
    %c0_10 = arith.constant 0 : index
    %c0_11 = arith.constant 0 : index
    %24 = vector.load %arg7[%c0_10, %c0_11] : memref<4x290xf32, #tpu.memory_space<vmem>>, vector<4x256xf32>
    %c1_i32_12 = arith.constant 1 : i32
    %25 = vector.broadcast %c1_i32_12 : i32 to vector<4x256xi32>
    %26 = arith.cmpi sge, %23, %25 : vector<4x256xi32>
    %cst_13 = arith.constant 0.000000e+00 : f32
    %27 = vector.broadcast %cst_13 : f32 to vector<4x256xf32>
    %28 = arith.select %26, %24, %27 : vector<4x256xi1>, vector<4x256xf32>
    %c0_14 = arith.constant 0 : index
    %c0_15 = arith.constant 0 : index
    %29 = vector.load %arg8[%c0_14, %c0_15] : memref<36x256xf32, #tpu.memory_space<vmem>>, vector<4x256xf32>
    tpu.vector_store %arg8[%c0_14, %c0_15], %28 {strides = array<i32>} : memref<36x256xf32, #tpu.memory_space<vmem>>, vector<4x256xf32>,
    %c0_16 = arith.constant 0 : index
    %c1 = arith.constant 1 : index
    %30 = vector.load %arg7[%c0_16, %c1] : memref<4x290xf32, #tpu.memory_space<vmem>>, vector<4x256xf32>
    %c4 = arith.constant 4 : index
    %c0_17 = arith.constant 0 : index
    %31 = vector.load %arg8[%c4, %c0_17] : memref<36x256xf32, #tpu.memory_space<vmem>>, vector<4x256xf32>
    tpu.vector_store %arg8[%c4, %c0_17], %30 {strides = array<i32>} : memref<36x256xf32, #tpu.memory_space<vmem>>, vector<4x256xf32>,
    %c0_18 = arith.constant 0 : index
    %c2 = arith.constant 2 : index
    %32 = vector.load %arg7[%c0_18, %c2] : memref<4x290xf32, #tpu.memory_space<vmem>>, vector<4x256xf32>
    %c14_i32 = arith.constant 14 : i32
    %33 = vector.broadcast %c14_i32 : i32 to vector<4x256xi32>
    %34 = arith.cmpi sle, %23, %33 : vector<4x256xi32>
    %cst_19 = arith.constant 0.000000e+00 : f32
    %35 = vector.broadcast %cst_19 : f32 to vector<4x256xf32>
    %36 = arith.select %34, %32, %35 : vector<4x256xi1>, vector<4x256xf32>
    %c8 = arith.constant 8 : index
    %c0_20 = arith.constant 0 : index
    %37 = vector.load %arg8[%c8, %c0_20] : memref<36x256xf32, #tpu.memory_space<vmem>>, vector<4x256xf32>
    tpu.vector_store %arg8[%c8, %c0_20], %36 {strides = array<i32>} : memref<36x256xf32, #tpu.memory_space<vmem>>, vector<4x256xf32>,
    %c0_21 = arith.constant 0 : index
    %c16 = arith.constant 16 : index
    %38 = vector.load %arg7[%c0_21, %c16] : memref<4x290xf32, #tpu.memory_space<vmem>>, vector<4x256xf32>
    %c1_i32_22 = arith.constant 1 : i32
    %39 = vector.broadcast %c1_i32_22 : i32 to vector<4x256xi32>
    %40 = arith.cmpi sge, %23, %39 : vector<4x256xi32>
    %cst_23 = arith.constant 0.000000e+00 : f32
    %41 = vector.broadcast %cst_23 : f32 to vector<4x256xf32>
    %42 = arith.select %40, %38, %41 : vector<4x256xi1>, vector<4x256xf32>
    %c12 = arith.constant 12 : index
    %c0_24 = arith.constant 0 : index
    %43 = vector.load %arg8[%c12, %c0_24] : memref<36x256xf32, #tpu.memory_space<vmem>>, vector<4x256xf32>
    tpu.vector_store %arg8[%c12, %c0_24], %42 {strides = array<i32>} : memref<36x256xf32, #tpu.memory_space<vmem>>, vector<4x256xf32>,
    %c0_25 = arith.constant 0 : index
    %c17_26 = arith.constant 17 : index
    %44 = vector.load %arg7[%c0_25, %c17_26] : memref<4x290xf32, #tpu.memory_space<vmem>>, vector<4x256xf32>
    %c16_27 = arith.constant 16 : index
    %c0_28 = arith.constant 0 : index
    %45 = vector.load %arg8[%c16_27, %c0_28] : memref<36x256xf32, #tpu.memory_space<vmem>>, vector<4x256xf32>
    tpu.vector_store %arg8[%c16_27, %c0_28], %44 {strides = array<i32>} : memref<36x256xf32, #tpu.memory_space<vmem>>, vector<4x256xf32>,
    %c0_29 = arith.constant 0 : index
    %c18 = arith.constant 18 : index
    %46 = vector.load %arg7[%c0_29, %c18] : memref<4x290xf32, #tpu.memory_space<vmem>>, vector<4x256xf32>
    %c14_i32_30 = arith.constant 14 : i32
    %47 = vector.broadcast %c14_i32_30 : i32 to vector<4x256xi32>
    %48 = arith.cmpi sle, %23, %47 : vector<4x256xi32>
    %cst_31 = arith.constant 0.000000e+00 : f32
    %49 = vector.broadcast %cst_31 : f32 to vector<4x256xf32>
    %50 = arith.select %48, %46, %49 : vector<4x256xi1>, vector<4x256xf32>
    %c20 = arith.constant 20 : index
    %c0_32 = arith.constant 0 : index
    %51 = vector.load %arg8[%c20, %c0_32] : memref<36x256xf32, #tpu.memory_space<vmem>>, vector<4x256xf32>
    tpu.vector_store %arg8[%c20, %c0_32], %50 {strides = array<i32>} : memref<36x256xf32, #tpu.memory_space<vmem>>, vector<4x256xf32>,
    %c0_33 = arith.constant 0 : index
    %c32 = arith.constant 32 : index
    %52 = vector.load %arg7[%c0_33, %c32] : memref<4x290xf32, #tpu.memory_space<vmem>>, vector<4x256xf32>
    %c1_i32_34 = arith.constant 1 : i32
    %53 = vector.broadcast %c1_i32_34 : i32 to vector<4x256xi32>
    %54 = arith.cmpi sge, %23, %53 : vector<4x256xi32>
    %cst_35 = arith.constant 0.000000e+00 : f32
    %55 = vector.broadcast %cst_35 : f32 to vector<4x256xf32>
    %56 = arith.select %54, %52, %55 : vector<4x256xi1>, vector<4x256xf32>
    %c24 = arith.constant 24 : index
    %c0_36 = arith.constant 0 : index
    %57 = vector.load %arg8[%c24, %c0_36] : memref<36x256xf32, #tpu.memory_space<vmem>>, vector<4x256xf32>
    tpu.vector_store %arg8[%c24, %c0_36], %56 {strides = array<i32>} : memref<36x256xf32, #tpu.memory_space<vmem>>, vector<4x256xf32>,
    %c0_37 = arith.constant 0 : index
    %c33 = arith.constant 33 : index
    %58 = vector.load %arg7[%c0_37, %c33] : memref<4x290xf32, #tpu.memory_space<vmem>>, vector<4x256xf32>
    %c28 = arith.constant 28 : index
    %c0_38 = arith.constant 0 : index
    %59 = vector.load %arg8[%c28, %c0_38] : memref<36x256xf32, #tpu.memory_space<vmem>>, vector<4x256xf32>
    tpu.vector_store %arg8[%c28, %c0_38], %58 {strides = array<i32>} : memref<36x256xf32, #tpu.memory_space<vmem>>, vector<4x256xf32>,
    %c0_39 = arith.constant 0 : index
    %c34 = arith.constant 34 : index
    %60 = vector.load %arg7[%c0_39, %c34] : memref<4x290xf32, #tpu.memory_space<vmem>>, vector<4x256xf32>
    %c14_i32_40 = arith.constant 14 : i32
    %61 = vector.broadcast %c14_i32_40 : i32 to vector<4x256xi32>
    %62 = arith.cmpi sle, %23, %61 : vector<4x256xi32>
    %cst_41 = arith.constant 0.000000e+00 : f32
    %63 = vector.broadcast %cst_41 : f32 to vector<4x256xf32>
    %64 = arith.select %62, %60, %63 : vector<4x256xi1>, vector<4x256xf32>
    %c32_42 = arith.constant 32 : index
    %c0_43 = arith.constant 0 : index
    %65 = vector.load %arg8[%c32_42, %c0_43] : memref<36x256xf32, #tpu.memory_space<vmem>>, vector<4x256xf32>
    tpu.vector_store %arg8[%c32_42, %c0_43], %64 {strides = array<i32>} : memref<36x256xf32, #tpu.memory_space<vmem>>, vector<4x256xf32>,
    %c0_44 = arith.constant 0 : index
    %c0_45 = arith.constant 0 : index
    %66 = vector.load %arg8[%c0_44, %c0_45] : memref<36x256xf32, #tpu.memory_space<vmem>>, vector<36x256xf32>
    %67 = arith.truncf %66 : vector<36x256xf32> to vector<36x256xbf16>
    %c0_46 = arith.constant 0 : index
    %c0_47 = arith.constant 0 : index
    %68 = vector.load %arg2[%c0_46, %c0_47] : memref<32x36xbf16, #tpu.memory_space<vmem>>, vector<32x36xbf16>
    %cst_48 = arith.constant dense<0.000000e+00> : vector<32x256xf32>
    %69 = tpu.matmul %68, %67, %cst_48 {dimension_numbers = #tpu.dot_dimension_numbers<[1], [0], [0], [1], [0, 0, 1, 1], [], []>} : vector<32x36xbf16>, vector<36x256xbf16>, vector<32x256xf32> -> vector<32x256xf32>
    %c0_49 = arith.constant 0 : index
    %c0_50 = arith.constant 0 : index
    %70 = vector.load %arg3[%c0_49, %c0_50] : memref<32x1xf32, #tpu.memory_space<vmem>>, vector<32x1xf32>
    %71 = vector.broadcast %70 : vector<32x1xf32> to vector<32x256xf32>
    %72 = arith.addf %69, %71 : vector<32x256xf32>
    %cst_51 = arith.constant 0.000000e+00 : f32
    %73 = vector.broadcast %cst_51 : f32 to vector<32x256xf32>
    %74 = arith.maximumf %72, %73 : vector<32x256xf32>
    %c0_52 = arith.constant 0 : index
    %c0_53 = arith.constant 0 : index
    %75 = vector.load %arg4[%c0_52, %c0_53] : memref<10x32xbf16, #tpu.memory_space<vmem>>, vector<10x32xbf16>
    %76 = arith.truncf %74 : vector<32x256xf32> to vector<32x256xbf16>
    %cst_54 = arith.constant dense<0.000000e+00> : vector<10x256xf32>
    %77 = tpu.matmul %75, %76, %cst_54 {dimension_numbers = #tpu.dot_dimension_numbers<[1], [0], [0], [1], [0, 0, 1, 1], [], []>} : vector<10x32xbf16>, vector<32x256xbf16>, vector<10x256xf32> -> vector<10x256xf32>
    %c0_55 = arith.constant 0 : index
    %c0_56 = arith.constant 0 : index
    %78 = vector.load %arg5[%c0_55, %c0_56] : memref<10x1xf32, #tpu.memory_space<vmem>>, vector<10x1xf32>
    %79 = vector.broadcast %78 : vector<10x1xf32> to vector<10x256xf32>
    %80 = arith.addf %77, %79 : vector<10x256xf32>
    %81 = vector.shape_cast %80 : vector<10x256xf32> to vector<1x10x256xf32>
    %c0_57 = arith.constant 0 : index
    %c0_58 = arith.constant 0 : index
    %c0_59 = arith.constant 0 : index
    %82 = vector.load %arg6[%c0_57, %c0_58, %c0_59] : memref<1x10x256xf32, #tpu.memory_space<vmem>>, vector<1x10x256xf32>
    tpu.vector_store %arg6[%c0_57, %c0_58, %c0_59], %81 {strides = array<i32>} : memref<1x10x256xf32, #tpu.memory_space<vmem>>, vector<1x10x256xf32>,
    return
  }
  func.func @transform_0(%arg0: i32) -> (i32, i32, i32) {
    %c0_i32 = arith.constant 0 : i32
    %c0_i32_0 = arith.constant 0 : i32
    %c0_i32_1 = arith.constant 0 : i32
    return %arg0, %c0_i32, %c0_i32_0 : i32, i32, i32
  }
  func.func @transform_1(%arg0: i32) -> (i32, i32) {
    %c0_i32 = arith.constant 0 : i32
    %c0_i32_0 = arith.constant 0 : i32
    %c0_i32_1 = arith.constant 0 : i32
    return %c0_i32, %c0_i32_0 : i32, i32
  }
  func.func @transform_2(%arg0: i32) -> (i32, i32) {
    %c0_i32 = arith.constant 0 : i32
    %c0_i32_0 = arith.constant 0 : i32
    %c0_i32_1 = arith.constant 0 : i32
    return %c0_i32, %c0_i32_0 : i32, i32
  }
  func.func @transform_3(%arg0: i32) -> (i32, i32) {
    %c0_i32 = arith.constant 0 : i32
    %c0_i32_0 = arith.constant 0 : i32
    %c0_i32_1 = arith.constant 0 : i32
    return %c0_i32, %c0_i32_0 : i32, i32
  }
  func.func @transform_4(%arg0: i32) -> (i32, i32) {
    %c0_i32 = arith.constant 0 : i32
    %c0_i32_0 = arith.constant 0 : i32
    %c0_i32_1 = arith.constant 0 : i32
    return %c0_i32, %c0_i32_0 : i32, i32
  }
  func.func @transform_5(%arg0: i32) -> (i32, i32, i32) {
    %c0_i32 = arith.constant 0 : i32
    %c0_i32_0 = arith.constant 0 : i32
    %c0_i32_1 = arith.constant 0 : i32
    return %arg0, %c0_i32, %c0_i32_0 : i32, i32, i32
  }
}

</mosaic_0001>

<bundles_post_ra>
// kernel: parallel_model.1
= control target key start
LH: loop header
LB: loop body
LE: loop exit
PB: predicated region body
PF: predicated region fallthrough
CT: control target
= control target key end

     0   :  { %s806_s18 = smov 0   ;;  %s928_s0 = inlined_call_operand.vmem [shape: f32[2,4,256], index: 0, kind: input, shape index: {}]   ;;  %s929_s1 = inlined_call_operand.vmem [shape: bf16[32,36], index: 1, kind: input, shape index: {}]   ;;  %s930_s2 = inlined_call_operand.vmem [shape: f32[32,1], index: 2, kind: input, shape index: {}]   ;;  %s931_s3 = inlined_call_operand.vmem [shape: bf16[10,32], index: 3, kind: input, shape index: {}]   ;;  %s932_s4 = inlined_call_operand.vmem [shape: f32[10,1], index: 4, kind: input, shape index: {}]   ;;  %s933_s5 = inlined_call_operand.vmem [shape: f32[2,10,256], index: 5, kind: output, shape index: {}]  }
   0x1 LB: > { %s709_s19 = sadd.s32 4294967295, %s763_s18   ;;  %p713_p0 = scmp.ge.s32.totalorder %s763_s18, 1  ;;  %s763_s18 = sphi %s806_s18, %s15_s18  }
   0x2   : > { %p187_p1 = scmp.lt.s32.totalorder %s763_s18, 3 }
   0x4   : > { %p188_p2 = pnand %p713_p0, %p187_p1 }
   0x5   : > { %p215_p3 = scmp.lt.s32.totalorder (!%p188_p2), %s709_s19, 1  ;;  %vm226_vm0 = vcmask (!%p188_p2), 134144   ;;  %vm228_vm1 = vcmask (!%p188_p2), 273544   ;;  %v765_v0 = vmov (!%p188_p2), 0.0   ;;  %s766_s24 = smov (!%p188_p2), 17   ;;  %v244_v2 = vlaneseq (!%p188_p2)  ;;  %v471_v26 = vld [vmem:[%s930_s2] sm:$0xff] (!%p188_p2) }
   0x6   : > { %191 = sbr.rel (%p188_p2) target bundleno = 769 (0x301), region = 40  ;;  %227 = vst.msk [vmem:[#allocation2] sm:$0xf] (!%p188_p2), %vm226_vm0, %v765_v0  ;;  %vm239_vm2 = vcmask (!%p188_p2), 1043592   ;;  %vm240_vm3 = vcmask (!%p188_p2), 1047556   ;;  %vm235_vm4 = vcmask (!%p188_p2), 138240  }
   0x7   : > { %229 = vst.msk [vmem:[#allocation2 + $0x8] sm:$0xf] (!%p188_p2), %vm228_vm1, %v765_v0  ;;  %v821_v3 = vand.u32 (!%p188_p2), 127, %v244_v2  ;;  %vm241_vm5 = vmor (!%p188_p2), %vm240_vm3, %vm239_vm2  ;;  %s767_s25 = smov (!%p188_p2), 96   ;;  %s768_s26 = smov (!%p188_p2), 112   ;;  %v775_v25 = vmov (!%p188_p2), 0  }
   0x8   : > { %s769_s27 = smov (!%p188_p2), 111   ;;  %s770_s28 = smov (!%p188_p2), 126   ;;  %551 = vmatprep.mubr.bf16.mxu0 (!%p188_p2), %v775_v25  ;;  %748 = vset.pattern.permute.xlu1 (!%p188_p2), %v775_v25  ;;  %v472_v27 = vld [vmem:[%s930_s2 + $0x8] sm:$0xff] (!%p188_p2)  ;;  %v473_v28 = vld [vmem:[%s930_s2 + $0x10] sm:$0xff] (!%p188_p2)  ;;  %v586_v29 = vld [vmem:[%s932_s4] sm:$0xff] (!%p188_p2)  ;;  %vm293_vm8 = vcmask (!%p188_p2), 1039360  }
   0x9   : > { %v825_v7 = vadd.s32 (!%p188_p2), 128, %v821_v3  ;;  %v251_v8 = vand.u32 (!%p188_p2), 15, %v821_v3  ;;  %s771_s29 = smov (!%p188_p2), 110   ;;  %s772_s30 = smov (!%p188_p2), 127   ;;  %749 = vset.pattern.permute.xlu0 (!%p188_p2), %v775_v25  ;;  %639 = vmatprep.mubr.bf16.mxu1 (!%p188_p2), %v775_v25  ;;  %v474_v30 = vld [vmem:[%s930_s2 + $0x18] sm:$0xff] (!%p188_p2)  ;;  %vm424_vm9 = vcmask (!%p188_p2), 777216  }
   0xa   : > { %s773_s6 = smov (!%p188_p2), 95   ;;  %s774_s7 = smov (!%p188_p2), 94   ;;  %v587_v31 = vld [vmem:[%s932_s4 + $0x8] sm:$0x3] (!%p188_p2)  ;;  %vm333_vm10 = vcmask (!%p188_p2), 916480   ;;  %vm313_vm11 = vcmask (!%p188_p2), 1031168  }
   0xb   : > { %v258_v9 = vand.u32 (!%p188_p2), 15, %v825_v7  ;;  %vm831_vm6 = vcmp.ge.s32.totalorder (!%p188_p2), %v251_v8, 1  ;;  %vm403_vm12 = vcmask (!%p188_p2), 785408   ;;  %vm880_vm13 = vcmp.le.s32.totalorder (!%p188_p2), %v251_v8, 14 }
   0xc   : > { %vm377_vm15 = vcmask (!%p188_p2), 900096   ;;  %vm442_vm1 = vcmask (!%p188_p2), 769024   ;;  %vm512_vm2 = vcmask (!%p188_p2), 1041408   ;;  %vm505_vm3 = vcmask (!%p188_p2), 293888  }
   0xd   : > { %s943_s19 = smov (!%p215_p3, %s709_s19), 1  ;;  %vm839_vm7 = vcmp.ge.s32.totalorder %v258_v9, 1  ;;  %vm886_vm14 = vcmp.le.s32.totalorder %v258_v9, 14 }
   0xe   : > { %s727_s20 = sshll.u32 %s943_s19, 3 }
   0xf   : > { %s219_s23 = scalar_lea.vmem %s928_s0, %s727_s20 }
  0x10   : > { %v230_v1 = vld [vmem:[%s219_s23] sm:$0xff] }
  0x11   : > { %232 = vrot.lane.b32.xlu0 %v230_v1, %s766_s24 }
  0x83   : > { %v233_v4 = vpop.permute.xlu0 %232 }
  0x84   : > { %v234_v5 = vrot.slane %v233_v4, 4 }
  0x86   : > { %v236_v6 = vsel %vm235_vm4, %v234_v5, %v233_v4  ;;  %243 = vst.msk [vmem:[#allocation2 + $0x8] sm:$0xf] %vm226_vm0, %v234_v5  ;;  %vm359_vm0 = vcmask 908288   ;;  %vm603_vm4 = vcmask 261120  }
  0x87   : > { %242 = vst.msk [vmem:[#allocation2] sm:$0xff] %vm241_vm5, %v236_v6 }
  0x8d   : > { %v393_v10 = vld [vmem:[#allocation2 + $0x8] sm:$0xf] }
  0x8e   : > { %v323_v11 = vld [vmem:[#allocation2 + $0x8] sm:$0xf]  ;;  %401 = vrot.lane.b32.xlu0 %v393_v10, %s767_s25  ;;  %v281_v13 = vld [vmem:[#allocation2] sm:$0xff] }
  0x8f   : > { %331 = vrot.lane.b32.xlu1 %v323_v11, %s768_s26  ;;  %v326_v15 = vcombine.high %v281_v13, %v281_v13  ;;  %v277_v16 = vsel %vm831_vm6, %v281_v13, 0.0  ;;  %v349_v17 = vld [vmem:[#allocation2 + $0x8] sm:$0xf]  ;;  %v285_v23 = vcombine.low %v281_v13, %v281_v13 }
  0x90   : > { %v301_v18 = vld [vmem:[#allocation2 + $0x8] sm:$0xf]  ;;  %279 = vst [vmem:[#allocation3] sm:$0xf] %v277_v16 }
  0x91   : > { %v278_v19 = vsel %vm839_vm7, %v326_v15, 0.0  ;;  %v367_v20 = vld [vmem:[#allocation2 + $0x8] sm:$0xf] }
  0x92   : > { %357 = vrot.lane.b32.xlu0 %v349_v17, %s769_s27  ;;  %280 = vst [vmem:[#allocation3 + $0x8] sm:$0xf] %v278_v19  ;;  %v752_v21 = vld [vmem:[#allocation2 + $0x8] ss:$0 sps:$4 sm:$0xff]  }
  0x93   : > { %311 = vrot.lane.b32.xlu1 %v301_v18, %s770_s28  ;;  %v753_v22 = vld [vmem:[#allocation2 + $0x8] ss:$0 sps:$4 sm:$0xff]  }
  0x94   : > { %v432_v24 = vld [vmem:[#allocation2 + $0x8] sm:$0xf] }
  0x96   : > { %289 = vrot.lane.b32.xlu0 %v281_v13, %s772_s30 }
  0x97   : > { %375 = vrot.lane.b32.xlu1 %v367_v20, %s771_s29 }
  0x9a   : > { %307 = vrot.lane.b32.xlu0 %v281_v13, %s770_s28 }
  0x9b   : > { %327 = vrot.lane.b32.xlu1 %v281_v13, %s768_s26 }
  0x9e   : > { %371 = vrot.lane.b32.xlu0 %v281_v13, %s771_s29 }
  0x9f   : > { %397 = vrot.lane.b32.xlu1 %v281_v13, %s767_s25 }
  0xa2   : > { %420 = vrot.lane.b32.xlu0 %v281_v13, %s773_s6 }
  0xa3   : > { %291 = vrot.lane.b32.xlu1 %v752_v21, %s772_s30 }
  0xa6   : > { %353 = vrot.lane.b32.xlu0 %v281_v13, %s769_s27 }
  0xa7   : > { %422 = vrot.lane.b32.xlu1 %v753_v22, %s773_s6 }
  0xaa   : > { %329 = vrot.lane.b32.xlu0 %v326_v15, %s768_s26 }
  0xab   : > { %287 = vrot.lane.b32.xlu1 %v285_v23, %s772_s30 }
  0xae   : > { %309 = vrot.lane.b32.xlu0 %v326_v15, %s770_s28  ;;  %s728_s28 = sshll.u32 %s943_s19, 5 }
  0xaf   : > { %399 = vrot.lane.b32.xlu1 %v326_v15, %s767_s25 }
  0xb2   : > { %373 = vrot.lane.b32.xlu0 %v326_v15, %s771_s29 }
  0xb3   : > { %355 = vrot.lane.b32.xlu1 %v326_v15, %s769_s27 }
  0xb6   : > { %436 = vrot.lane.b32.xlu0 %v281_v13, %s774_s7 }
  0xb7   : > { %418 = vrot.lane.b32.xlu1 %v285_v23, %s773_s6  ;;  %s224_s6 = scalar_lea.vmem %s933_s5, %s728_s28 }
  0xba   : > { %440 = vrot.lane.b32.xlu0 %v432_v24, %s774_s7 }
  0xbb   : > { %438 = vrot.lane.b32.xlu1 %v326_v15, %s774_s7 }
  0xbe   : > { %482 = vperm.xlu0 %749, %v472_v27  }
  0xbf   : > { %477 = vperm.xlu1 %748, %v471_v26  }
  0xc2   : > { %590 = vperm.xlu0 %749, %v586_v29  }
  0xc3   : > { %487 = vperm.xlu1 %748, %v473_v28  }
  0xc7   : > { %492 = vperm.xlu1 %748, %v474_v30  }
  0xcb   : > { %595 = vperm.xlu1 %748, %v587_v31  }
 0x100   : > { %v402_v32 = vpop.permute.xlu0 %401 }
 0x101   : > { %v332_v33 = vpop.permute.xlu1 %331 }
 0x104   : > { %v358_v34 = vpop.permute.xlu0 %357 }
 0x105   : > { %v312_v35 = vpop.permute.xlu1 %311 }
 0x108   : > { %v290_v37 = vpop.permute.xlu0 %289 }
 0x109   : > { %v376_v36 = vpop.permute.xlu1 %375 }
 0x10c   : > { %v308_v39 = vpop.permute.xlu0 %307 }
 0x10d   : > { %v328_v38 = vpop.permute.xlu1 %327 }
 0x110   : > { %v372_v41 = vpop.permute.xlu0 %371 }
 0x111   : > { %v398_v40 = vpop.permute.xlu1 %397 }
 0x114   : > { %v421_v43 = vpop.permute.xlu0 %420 }
 0x115   : > { %v292_v42 = vpop.permute.xlu1 %291 }
 0x116   : > { %v295_v44 = vsel %vm293_vm8, %v290_v37, %v292_v42  ;;  %v754_v42 = vld [vmem:[%s929_s1] sm:$0xff]  }
 0x117   : > { %299 = vst [vmem:[#allocation3 + $0x8] sm:$0xf0] %v295_v44 }
 0x118   : > { %v354_v46 = vpop.permute.xlu0 %353 }
 0x119   : > { %v423_v45 = vpop.permute.xlu1 %422 }
 0x11a   : > { %v426_v47 = vsel %vm424_vm9, %v421_v43, %v423_v45 }
 0x11b   : > { %430 = vst [vmem:[#allocation3 + $0x38] sm:$0xf0] %v426_v47 }
 0x11c   : > { %v330_v48 = vpop.permute.xlu0 %329 }
 0x11d   : > { %v288_v49 = vpop.permute.xlu1 %287  ;;  %v334_v50 = vsel %vm333_vm10, %v328_v38, %v330_v48  ;;  %v335_v51 = vsel %vm333_vm10, %v330_v48, %v332_v33 }
 0x11e   : > { %v294_v52 = vsel %vm293_vm8, %v288_v49, %v290_v37  ;;  %v338_v53 = vsel %vm831_vm6, %v334_v50, 0.0  ;;  %v339_v54 = vsel %vm839_vm7, %v335_v51, 0.0  ;;  %v452_v18 = vld [vmem:[#allocation3 + $0x8] sm:$0xff] }
 0x11f   : > { %298 = vst [vmem:[#allocation3] sm:$0xf0] %v294_v52  ;;  %v342_v55 = vrot.slane %v338_v53, 4  ;;  %v343_v56 = vrot.slane %v339_v54, 4 }
 0x120   : > { %v310_v59 = vpop.permute.xlu0 %309 }
 0x121   : > { %v400_v60 = vpop.permute.xlu1 %399  ;;  %346 = vst [vmem:[#allocation3 + $0x10] sm:$0xf0] %v342_v55  ;;  %347 = vst [vmem:[#allocation3 + $0x18] sm:$0xf0] %v343_v56  ;;  %v314_v61 = vsel %vm313_vm11, %v308_v39, %v310_v59  ;;  %v315_v62 = vsel %vm313_vm11, %v310_v59, %v312_v35 }
 0x122   : > { %v404_v63 = vsel %vm403_vm12, %v398_v40, %v400_v60  ;;  %v405_v0 = vsel %vm403_vm12, %v400_v60, %v402_v32  ;;  %v318_v1 = vsel %vm880_vm13, %v314_v61, 0.0  ;;  %v319_v2 = vsel %vm886_vm14, %v315_v62, 0.0 }
 0x123   : > { %v408_v3 = vsel %vm831_vm6, %v404_v63, 0.0  ;;  %v409_v4 = vsel %vm839_vm7, %v405_v0, 0.0  ;;  %320 = vst [vmem:[#allocation3 + $0x10] sm:$0xf] %v318_v1  ;;  %321 = vst [vmem:[#allocation3 + $0x18] sm:$0xf] %v319_v2 }
 0x124   : > { %410 = vst [vmem:[#allocation3 + $0x30] sm:$0xf] %v408_v3  ;;  %411 = vst [vmem:[#allocation3 + $0x38] sm:$0xf] %v409_v4  ;;  %v374_v5 = vpop.permute.xlu0 %373 }
 0x125   : > { %v356_v6 = vpop.permute.xlu1 %355  ;;  %v378_v7 = vsel %vm377_vm15, %v372_v41, %v374_v5  ;;  %v379_v8 = vsel %vm377_vm15, %v374_v5, %v376_v36 }
 0x126   : > { %v360_v9 = vsel %vm359_vm0, %v354_v46, %v356_v6  ;;  %v361_v10 = vsel %vm359_vm0, %v356_v6, %v358_v34  ;;  %v382_v11 = vsel %vm880_vm13, %v378_v7, 0.0  ;;  %v383_v12 = vsel %vm886_vm14, %v379_v8, 0.0  ;;  %v451_v20 = vld [vmem:[#allocation3] sm:$0xff] }
 0x127   : > { %364 = vst [vmem:[#allocation3 + $0x20] sm:$0xf] %v360_v9  ;;  %365 = vst [vmem:[#allocation3 + $0x28] sm:$0xf] %v361_v10  ;;  %v386_v13 = vrot.slane %v382_v11, 4  ;;  %v387_v14 = vrot.slane %v383_v12, 4 }
 0x128   : > { %v437_v15 = vpop.permute.xlu0 %436  ;;  %v756_v11 = vld [vmem:[%s931_s3] sm:$0x1f]  }
 0x129   : > { %v419_v16 = vpop.permute.xlu1 %418  ;;  %390 = vst [vmem:[#allocation3 + $0x20] sm:$0xf0] %v386_v13  ;;  %391 = vst [vmem:[#allocation3 + $0x28] sm:$0xf0] %v387_v14 }
 0x12a   : > { %v425_v17 = vsel %vm424_vm9, %v419_v16, %v421_v43  ;;  %v454_v19 = vld [vmem:[#allocation3 + $0x18] sm:$0xff]  ;;  %v453_v21 = vld [vmem:[#allocation3 + $0x10] sm:$0xff] }
 0x12b   : > { %429 = vst [vmem:[#allocation3 + $0x30] sm:$0xf0] %v425_v17  ;;  %v462_v22 = vpack.c.bf16 %v454_v19, %v452_v18  ;;  %v461_v23 = vpack.c.bf16 %v453_v21, %v451_v20  ;;  %v458_v32 = vld [vmem:[#allocation3 + $0x38] sm:$0xff] }
 0x12c   : > { %v441_v24 = vpop.permute.xlu0 %440  ;;  %v755_v43 = vld [vmem:[%s929_s1 + $0x8] sm:$0xff]  }
 0x12d   : > { %v439_v26 = vpop.permute.xlu1 %438  ;;  %519 = vmatprep.subr.bf16.mxu0 %v462_v22 }
 0x12e   : > { %v443_v27 = vsel %vm442_vm1, %v437_v15, %v439_v26  ;;  %v444_v28 = vsel %vm442_vm1, %v439_v26, %v441_v24  ;;  %520 = vmatpush1.bf16.msra.mxu0 %v461_v23 }
 0x12f   : > { %v447_v29 = vsel %vm880_vm13, %v443_v27, 0.0  ;;  %v448_v30 = vsel %vm886_vm14, %v444_v28, 0.0 }
 0x130   : > { %449 = vst [vmem:[#allocation3 + $0x40] sm:$0xf] %v447_v29  ;;  %450 = vst [vmem:[#allocation3 + $0x48] sm:$0xf] %v448_v30  ;;  %v456_v31 = vld [vmem:[#allocation3 + $0x28] sm:$0xff]  ;;  %v455_v33 = vld [vmem:[#allocation3 + $0x20] sm:$0xff] }
 0x131   : > { %v464_v34 = vpack.c.bf16 %v458_v32, %v456_v31 }
 0x132   : > { %v457_v35 = vld [vmem:[#allocation3 + $0x30] sm:$0xff] }
 0x133   : > { %v463_v36 = vpack.c.bf16 %v457_v35, %v455_v33  ;;  %521 = vmatprep.subr.bf16.mxu0 %v464_v34 }
 0x135   : > { %522 = vmatpush1.bf16.msra.mxu0 %v463_v36 }
 0x137   : > { %v460_v37 = vld [vmem:[#allocation3 + $0x48] sm:$0xf]  ;;  %v459_v38 = vld [vmem:[#allocation3 + $0x40] sm:$0xf] }
 0x138   : > { %v466_v39 = vpack.c.bf16 %v460_v37, %v460_v37  ;;  %v465_v40 = vpack.c.bf16 %v459_v38, %v459_v38 }
 0x13a   : > { %720 = vmatprep.subr.msk.bf16.mxu0 %vm512_vm2, %v466_v39  ;;  %v514_v41 = vsel %vm512_vm2, %v465_v40, 0 }
 0x13b   : > { %524 = vmatpush1.bf16.msra.mxu0 %v514_v41 }
 0x13d   : > { %v483_v46 = vpop.permute.xlu0 %482 }
 0x13e   : > { %721 = vmatmul.mubr.msk.bf16.vlgmr.msra.gmra.mrb[0].mxu0 %vm505_vm3, %v754_v42  ;;  %v478_v44 = vpop.permute.xlu1 %477 }
 0x13f   : > { %561 = vmatprep.mubr.bf16.mxu0 %v775_v25 }
 0x141   : > { %v591_v12 = vpop.permute.xlu0 %590 }
 0x142   : > { %v488_v53 = vpop.permute.xlu1 %487 }
 0x146   : > { %722 = vmatmul.mubr.msk.bf16.gmra.mrb[4].mxu0 %vm505_vm3, %v755_v43  ;;  %v493_v63 = vpop.permute.xlu1 %492 }
 0x14a   : > { %v596_v16 = vpop.permute.xlu1 %595 }
 0x211   : > { %v553_v45 = vpop.f32.mrb[0].mxu0 }
 0x212   : > { %v554_v47 = vadd.f32 %v553_v45, %v478_v44  ;;  %v555_v48 = vpop.f32.mrb[1].mxu0 }
 0x213   : > { %v556_v49 = vadd.f32 %v555_v48, %v478_v44  ;;  %v557_v50 = vpop.f32.mrb[2].mxu0 }
 0x214   : > { %v558_v51 = vadd.f32 %v557_v50, %v483_v46  ;;  %v559_v52 = vpop.f32.mrb[3].mxu0  ;;  %v572_v55 = vmax.f32 %v554_v47, 0.0 }
 0x215   : > { %v560_v54 = vadd.f32 %v559_v52, %v483_v46  ;;  %v573_v57 = vmax.f32 %v556_v49, 0.0 }
 0x216   : > { %v574_v56 = vmax.f32 %v558_v51, 0.0 }
 0x217   : > { %v575_v25 = vmax.f32 %v560_v54, 0.0 }
 0x218   : > { %v582_v58 = vpack.c.bf16 %v574_v56, %v572_v55 }
 0x219   : > { %v563_v59 = vpop.f32.mrb[4].mxu0  ;;  %v583_v60 = vpack.c.bf16 %v575_v25, %v573_v57 }
 0x21a   : > { %v564_v61 = vadd.f32 %v563_v59, %v488_v53  ;;  %v565_v62 = vpop.f32.mrb[5].mxu0 }
 0x21b   : > { %v566_v0 = vadd.f32 %v565_v62, %v488_v53  ;;  %v567_v1 = vpop.f32.mrb[6].mxu0  ;;  %607 = vmatprep.subr.bf16.mxu1 %v583_v60 }
 0x21c   : > { %v568_v2 = vadd.f32 %v567_v1, %v493_v63  ;;  %v569_v3 = vpop.f32.mrb[7].mxu0  ;;  %608 = vmatpush1.bf16.msra.mxu1 %v582_v58  ;;  %v576_v5 = vmax.f32 %v564_v61, 0.0 }
 0x21d   : > { %v570_v4 = vadd.f32 %v569_v3, %v493_v63  ;;  %v577_v7 = vmax.f32 %v566_v0, 0.0 }
 0x21e   : > { %v578_v6 = vmax.f32 %v568_v2, 0.0 }
 0x21f   : > { %v579_v8 = vmax.f32 %v570_v4, 0.0 }
 0x220   : > { %v584_v9 = vpack.c.bf16 %v578_v6, %v576_v5 }
 0x221   : > { %v585_v10 = vpack.c.bf16 %v579_v8, %v577_v7 }
 0x223   : > { %609 = vmatprep.subr.bf16.mxu1 %v585_v10 }
 0x224   : > { %610 = vmatpush1.bf16.msra.mxu1 %v584_v9 }
 0x227   : > { %724 = vmatmul.mubr.msk.bf16.vlgmr.msra.gmra.mrb[0].mxu1 %vm603_vm4, %v756_v11 }
 0x2fa   : > { %v641_v13 = vpop.f32.mrb[0].mxu1 }
 0x2fb   : > { %v642_v14 = vadd.f32 %v641_v13, %v591_v12  ;;  %v643_v15 = vpop.f32.mrb[1].mxu1 }
 0x2fc   : > { %v644_v17 = vadd.f32 %v643_v15, %v591_v12  ;;  %v645_v18 = vpop.f32.mrb[2].mxu1 }
 0x2fd   : > { %650 = vst [vmem:[%s224_s6] sm:$0xff] %v642_v14  ;;  %v646_v19 = vadd.f32 %v645_v18, %v596_v16  ;;  %v647_v20 = vpop.f32.mrb[3].mxu1 }
 0x2fe   : > { %651 = vst [vmem:[%s224_s6 + $0x8] sm:$0xff] %v644_v17  ;;  %v648_v21 = vadd.f32 %v647_v20, %v596_v16 }
 0x2ff   : > { %652 = vst [vmem:[%s224_s6 + $0x10] sm:$0x3] %v646_v19 }
 0x300   : > { %653 = vst [vmem:[%s224_s6 + $0x18] sm:$0x3] %v648_v21 }
 0x301 PF: > { %s15_s18 = sadd.s32 1, %s763_s18  }
 0x302   : > { %p12_p4 = scmp.ge.s32.totalorder %s15_s18, 4  }
 0x304   :  { %14 = sbr.rel (!%p12_p4) target bundleno = 1 (0x1), region = 70 }

</bundles_post_ra>
